<compile_context>
chip_gen: v7x
topology: tpu7x:2x2x1
jax: 0.10.0
libtpu: 0.0.40
codegen_flags: <defaults>
</compile_context>

<pallas_src>
import jax
import jax.numpy as jnp
from jax import lax
from jax.experimental import pallas as pl
from jax.experimental.pallas import tpu as pltpu


def mlp_kernel(x_ref, w1_ref, b1_ref, w2_ref, b2_ref, w3_ref, b3_ref, o_ref):
    # x tile: (block_b, D), caller's dtype (f32).  Cast to bf16 here so the HBM stream
    # is a single pass (VPU cast hides under the tile DMA).
    xb = x_ref[...].astype(jnp.bfloat16)

    # Layer 1: h1[f, b] = sum_d w1[f, d] * x[b, d]  -- bf16 x bf16 -> f32 MXU accumulate.
    # (dot_general contracting the RHS's last dim is exactly pl.dot(w1, x, trans_b=True).)
    h1 = lax.dot_general(w1_ref[...], xb,
                         dimension_numbers=(((1,), (1,)), ((), ())),
                         preferred_element_type=jnp.float32)            # (H1, block_b)
    h1 = jnp.maximum(h1 + b1_ref[...], 0.0)
    # TODO(synk): train-mode Dropout(0.3) would need pltpu.prng_seed/prng_random_bits
    # masking + 1/(1-p) scaling; inference mode is identity.

    # Layer 2: bf16 operands (MXU-native on all generations), f32 accumulate.
    h2 = jnp.dot(w2_ref[...], h1.astype(jnp.bfloat16),
                 preferred_element_type=jnp.float32)                    # (H2, block_b)
    h2 = jnp.maximum(h2 + b2_ref[...], 0.0)

    # Layer 3 (H2 -> 1): VPU broadcast-multiply + sublane (XLU) reduction; the result is
    # already a lane-dense (1, block_b) row, so the store below is a dense vst.
    z = jnp.sum(h2 * w3_ref[...], axis=0, keepdims=True) + b3_ref[...]  # (1, block_b)
    o_ref[...] = jax.nn.sigmoid(z).astype(o_ref.dtype)


def _pick_block_b(padded_b):
    """padded_b is a multiple of 256; pick the largest tile that keeps grid_b >= 2."""
    for cand in (8192, 4096, 2048, 1024, 512, 256, 128):
        if padded_b % cand == 0 and padded_b // cand >= 2:
            return cand
    return 128  # unreachable for padded_b >= 256


def mlp_forward(x, params, *, block_b=None):
    """x: [B, D] float.  params: PyTorch-layout weights (out_features, in_features)."""
    B, D = x.shape
    H1 = params["w1"].shape[0]
    H2 = params["w2"].shape[0]

    # Pad batch to a multiple of 256: guarantees >= 2 grid steps (v7x megacore) and
    # avoids the old "whole batch in one step" fallback that blew up VMEM with f32
    # intermediates.  For already-divisible batches the pad is a no-op (no extra pass).
    padded_b = ((B + 255) // 256) * 256
    x_in = x if padded_b == B else jnp.pad(x, ((0, padded_b - B), (0, 0)))

    if block_b is None:
        block_b = _pick_block_b(padded_b)
    assert padded_b % block_b == 0 and block_b % 128 == 0
    grid_b = padded_b // block_b

    # Only the tiny resident weights are cast wrapper-side; the big x stream is cast
    # in-kernel.  MXU operands bf16, everything post-matmul f32.
    w1 = params["w1"].astype(jnp.bfloat16)                       # (H1, D)
    b1 = params["b1"].reshape(H1, 1).astype(jnp.float32)
    w2 = params["w2"].astype(jnp.bfloat16)                       # (H2, H1)
    b2 = params["b2"].reshape(H2, 1).astype(jnp.float32)
    w3 = params["w3"].reshape(H2, 1).astype(jnp.float32)         # (1, H2) -> column
    b3 = params["b3"].reshape(1, 1).astype(jnp.float32)

    def rep(shape):
        return pl.BlockSpec(shape, lambda i: tuple(0 for _ in shape))

    flops = 2 * padded_b * (D * H1 + H1 * H2 + H2)
    bytes_accessed = (x_in.size * x_in.dtype.itemsize + padded_b * 4 +
                      sum(int(a.size) * a.dtype.itemsize
                          for a in (w1, b1, w2, b2, w3, b3)))
    cost = pl.CostEstimate(flops=flops, transcendentals=padded_b,
                           bytes_accessed=bytes_accessed)

    out_row = pl.pallas_call(
        mlp_kernel,
        out_shape=jax.ShapeDtypeStruct((1, padded_b), jnp.float32),
        grid_spec=pltpu.PrefetchScalarGridSpec(
            num_scalar_prefetch=0,
            grid=(grid_b,),
            in_specs=[
                pl.BlockSpec((block_b, D), lambda i: (i, 0)),    # streamed x tile (f32)
                rep((H1, D)), rep((H1, 1)),                      # layer 1 (resident)
                rep((H2, H1)), rep((H2, 1)),                     # layer 2 (resident)
                rep((H2, 1)), rep((1, 1)),                       # layer 3 (resident)
            ],
            out_specs=pl.BlockSpec((1, block_b), lambda i: (0, i)),  # lane-dense row
        ),
        compiler_params=pltpu.CompilerParams(
            dimension_semantics=("parallel",)),                  # megacore on v7x
        cost_estimate=cost,
    )(x_in, w1, b1, w2, b2, w3, b3)

    return out_row[0, :B].reshape(B, 1)


def init_params(input_dim, key):
    """Deterministic init mimicking nn.Linear (weights in PyTorch (out, in) layout)."""
    k1, k2, k3, k4, k5, k6 = jax.random.split(key, 6)

    def lin(kw, kb, fan_in, fan_out):
        bound = 1.0 / (fan_in ** 0.5)
        w = jax.random.uniform(kw, (fan_out, fan_in), jnp.float32, -bound, bound)
        b = jax.random.uniform(kb, (fan_out,), jnp.float32, -bound, bound)
        return w, b

    w1, b1 = lin(k1, k2, input_dim, 64)
    w2, b2 = lin(k3, k4, 64, 32)
    w3, b3 = lin(k5, k6, 32, 1)
    return dict(w1=w1, b1=b1, w2=w2, b2=b2, w3=w3, b3=b3)


def mlp_reference(x, p):
    """Pure-JAX reference using the same boundary dtypes as the kernel."""
    xb = x.astype(jnp.bfloat16)
    w1 = p["w1"].astype(jnp.bfloat16)
    h1 = jnp.dot(xb, w1.T, preferred_element_type=jnp.float32) + p["b1"][None, :]
    h1 = jnp.maximum(h1, 0.0)
    w2 = p["w2"].astype(jnp.bfloat16)
    h2 = jnp.dot(h1.astype(jnp.bfloat16), w2.T,
                 preferred_element_type=jnp.float32) + p["b2"][None, :]
    h2 = jnp.maximum(h2, 0.0)
    z = jnp.dot(h2, p["w3"].T) + p["b3"][None, :]
    return jax.nn.sigmoid(z)


if __name__ == "__main__":
    key = jax.random.PRNGKey(0)
    kx, kp = jax.random.split(key)

    batch, input_dim = 8, 32
    x = jax.random.normal(kx, (batch, input_dim), jnp.float32)
    params = init_params(input_dim, kp)

    out = jax.block_until_ready(mlp_forward(x, params))
    ref = mlp_reference(x, params)

    assert out.shape == (batch, 1), out.shape
    assert jnp.allclose(out, ref, atol=1e-3, rtol=1e-3), "mismatch vs reference"

    print("KERNEL_OK")
</pallas_src>

<mosaic_0001>
module attributes {stable_mosaic.version = 11 : i64} {
  func.func @mlp_kernel(%arg0: i32, %arg1: memref<128x32xf32, #tpu.memory_space<vmem>>, %arg2: memref<64x32xbf16, #tpu.memory_space<vmem>>, %arg3: memref<64x1xf32, #tpu.memory_space<vmem>>, %arg4: memref<32x64xbf16, #tpu.memory_space<vmem>>, %arg5: memref<32x1xf32, #tpu.memory_space<vmem>>, %arg6: memref<32x1xf32, #tpu.memory_space<vmem>>, %arg7: memref<1x1xf32, #tpu.memory_space<vmem>>, %arg8: memref<1x128xf32, #tpu.memory_space<vmem>>) attributes {dimension_semantics = [#tpu.dimension_semantics<parallel>], iteration_bounds = array<i64: 2>, scalar_prefetch = 0 : i64, scratch_operands = 0 : i64, tpu.core_type = #tpu.core_type<tc>, window_params = [{transform_indices = @transform_0, window_bounds = array<i64: 128, 32>}, {pipeline_mode = #tpu.pipeline_mode<synchronous>, transform_indices = @transform_1, window_bounds = array<i64: 64, 32>}, {pipeline_mode = #tpu.pipeline_mode<synchronous>, transform_indices = @transform_2, window_bounds = array<i64: 64, 1>}, {pipeline_mode = #tpu.pipeline_mode<synchronous>, transform_indices = @transform_3, window_bounds = array<i64: 32, 64>}, {pipeline_mode = #tpu.pipeline_mode<synchronous>, transform_indices = @transform_4, window_bounds = array<i64: 32, 1>}, {pipeline_mode = #tpu.pipeline_mode<synchronous>, transform_indices = @transform_5, window_bounds = array<i64: 32, 1>}, {pipeline_mode = #tpu.pipeline_mode<synchronous>, transform_indices = @transform_6, window_bounds = array<i64: 1, 1>}, {transform_indices = @transform_7, window_bounds = array<i64: 1, 128>}]} {
    %c0 = arith.constant 0 : index
    %c0_0 = arith.constant 0 : index
    %0 = vector.load %arg1[%c0, %c0_0] : memref<128x32xf32, #tpu.memory_space<vmem>>, vector<128x32xf32>
    %1 = arith.truncf %0 : vector<128x32xf32> to vector<128x32xbf16>
    %c0_1 = arith.constant 0 : index
    %c0_2 = arith.constant 0 : index
    %2 = vector.load %arg2[%c0_1, %c0_2] : memref<64x32xbf16, #tpu.memory_space<vmem>>, vector<64x32xbf16>
    %cst = arith.constant dense<0.000000e+00> : vector<64x128xf32>
    %3 = tpu.matmul %2, %1, %cst {dimension_numbers = #tpu.dot_dimension_numbers<[1], [1], [0], [0], [0, 0, 1, 0], [], []>} : vector<64x32xbf16>, vector<128x32xbf16>, vector<64x128xf32> -> vector<64x128xf32>
    %c0_3 = arith.constant 0 : index
    %c0_4 = arith.constant 0 : index
    %4 = vector.load %arg3[%c0_3, %c0_4] : memref<64x1xf32, #tpu.memory_space<vmem>>, vector<64x1xf32>
    %5 = vector.broadcast %4 : vector<64x1xf32> to vector<64x128xf32>
    %6 = arith.addf %3, %5 : vector<64x128xf32>
    %cst_5 = arith.constant 0.000000e+00 : f32
    %7 = vector.broadcast %cst_5 : f32 to vector<64x128xf32>
    %8 = arith.maximumf %6, %7 : vector<64x128xf32>
    %c0_6 = arith.constant 0 : index
    %c0_7 = arith.constant 0 : index
    %9 = vector.load %arg4[%c0_6, %c0_7] : memref<32x64xbf16, #tpu.memory_space<vmem>>, vector<32x64xbf16>
    %10 = arith.truncf %8 : vector<64x128xf32> to vector<64x128xbf16>
    %cst_8 = arith.constant dense<0.000000e+00> : vector<32x128xf32>
    %11 = tpu.matmul %9, %10, %cst_8 {dimension_numbers = #tpu.dot_dimension_numbers<[1], [0], [0], [1], [0, 0, 1, 1], [], []>} : vector<32x64xbf16>, vector<64x128xbf16>, vector<32x128xf32> -> vector<32x128xf32>
    %c0_9 = arith.constant 0 : index
    %c0_10 = arith.constant 0 : index
    %12 = vector.load %arg5[%c0_9, %c0_10] : memref<32x1xf32, #tpu.memory_space<vmem>>, vector<32x1xf32>
    %13 = vector.broadcast %12 : vector<32x1xf32> to vector<32x128xf32>
    %14 = arith.addf %11, %13 : vector<32x128xf32>
    %cst_11 = arith.constant 0.000000e+00 : f32
    %15 = vector.broadcast %cst_11 : f32 to vector<32x128xf32>
    %16 = arith.maximumf %14, %15 : vector<32x128xf32>
    %c0_12 = arith.constant 0 : index
    %c0_13 = arith.constant 0 : index
    %17 = vector.load %arg6[%c0_12, %c0_13] : memref<32x1xf32, #tpu.memory_space<vmem>>, vector<32x1xf32>
    %18 = vector.broadcast %17 : vector<32x1xf32> to vector<32x128xf32>
    %19 = arith.mulf %16, %18 : vector<32x128xf32>
    %cst_14 = arith.constant dense<0.000000e+00> : vector<128xf32>
    %20 = vector.multi_reduction <add>, %19, %cst_14 [0] : vector<32x128xf32> to vector<128xf32>
    %21 = vector.shape_cast %20 : vector<128xf32> to vector<1x128xf32>
    %c0_15 = arith.constant 0 : index
    %c0_16 = arith.constant 0 : index
    %22 = vector.load %arg7[%c0_15, %c0_16] : memref<1x1xf32, #tpu.memory_space<vmem>>, vector<1x1xf32>
    %23 = vector.broadcast %22 : vector<1x1xf32> to vector<1x128xf32>
    %24 = arith.addf %21, %23 : vector<1x128xf32>
    %25 = arith.negf %24 : vector<1x128xf32>
    %26 = math.exp %25 : vector<1x128xf32>
    %cst_17 = arith.constant 1.000000e+00 : f32
    %27 = vector.broadcast %cst_17 : f32 to vector<1x128xf32>
    %28 = arith.addf %27, %26 : vector<1x128xf32>
    %29 = arith.divf %27, %28 : vector<1x128xf32>
    %c0_18 = arith.constant 0 : index
    %c0_19 = arith.constant 0 : index
    %30 = vector.load %arg8[%c0_18, %c0_19] : memref<1x128xf32, #tpu.memory_space<vmem>>, vector<1x128xf32>
    tpu.vector_store %arg8[%c0_18, %c0_19], %29 {strides = array<i32>} : memref<1x128xf32, #tpu.memory_space<vmem>>, vector<1x128xf32>,
    return
  }
  func.func @transform_0(%arg0: i32) -> (i32, i32) {
    %c0_i32 = arith.constant 0 : i32
    %c0_i32_0 = arith.constant 0 : i32
    return %arg0, %c0_i32 : i32, i32
  }
  func.func @transform_1(%arg0: i32) -> (i32, i32) {
    %c0_i32 = arith.constant 0 : i32
    %c0_i32_0 = arith.constant 0 : i32
    %c0_i32_1 = arith.constant 0 : i32
    return %c0_i32, %c0_i32_0 : i32, i32
  }
  func.func @transform_2(%arg0: i32) -> (i32, i32) {
    %c0_i32 = arith.constant 0 : i32
    %c0_i32_0 = arith.constant 0 : i32
    %c0_i32_1 = arith.constant 0 : i32
    return %c0_i32, %c0_i32_0 : i32, i32
  }
  func.func @transform_3(%arg0: i32) -> (i32, i32) {
    %c0_i32 = arith.constant 0 : i32
    %c0_i32_0 = arith.constant 0 : i32
    %c0_i32_1 = arith.constant 0 : i32
    return %c0_i32, %c0_i32_0 : i32, i32
  }
  func.func @transform_4(%arg0: i32) -> (i32, i32) {
    %c0_i32 = arith.constant 0 : i32
    %c0_i32_0 = arith.constant 0 : i32
    %c0_i32_1 = arith.constant 0 : i32
    return %c0_i32, %c0_i32_0 : i32, i32
  }
  func.func @transform_5(%arg0: i32) -> (i32, i32) {
    %c0_i32 = arith.constant 0 : i32
    %c0_i32_0 = arith.constant 0 : i32
    %c0_i32_1 = arith.constant 0 : i32
    return %c0_i32, %c0_i32_0 : i32, i32
  }
  func.func @transform_6(%arg0: i32) -> (i32, i32) {
    %c0_i32 = arith.constant 0 : i32
    %c0_i32_0 = arith.constant 0 : i32
    %c0_i32_1 = arith.constant 0 : i32
    return %c0_i32, %c0_i32_0 : i32, i32
  }
  func.func @transform_7(%arg0: i32) -> (i32, i32) {
    %c0_i32 = arith.constant 0 : i32
    %c0_i32_0 = arith.constant 0 : i32
    return %c0_i32, %arg0 : i32, i32
  }
}

</mosaic_0001>

<bundles_post_ra>
// kernel: tpu_custom_call.1
= control target key start
LH: loop header
LB: loop body
LE: loop exit
PB: predicated region body
PF: predicated region fallthrough
CT: control target
= control target key end

     0   :  { %s1166_s0 = inlined_call_operand.vmem [shape: f32[256,32], index: 0, kind: input, shape index: {}]   ;;  %s1167_s1 = inlined_call_operand.vmem [shape: bf16[64,32], index: 1, kind: input, shape index: {}]   ;;  %s1168_s2 = inlined_call_operand.vmem [shape: f32[64,1], index: 2, kind: input, shape index: {}]   ;;  %s1169_s3 = inlined_call_operand.vmem [shape: bf16[32,64], index: 3, kind: input, shape index: {}]   ;;  %s1170_s4 = inlined_call_operand.vmem [shape: f32[32,1], index: 4, kind: input, shape index: {}]   ;;  %s1171_s5 = inlined_call_operand.vmem [shape: f32[32,1], index: 5, kind: input, shape index: {}]   ;;  %s1172_s6 = inlined_call_operand.<no memory space> [shape: f32[1,1], index: 6, kind: input, shape index: {}]   ;;  %s1173_s7 = inlined_call_operand.hbm [shape: f32[1,256], index: 7, kind: output, shape index: {}]  }
   0x1   :  { %v12_v0 = vstv %s1172_s6 }
   0x2   :  { %13 = vst [vmem:[#allocation2] sm:$0x1] %v12_v0 }
   0x3   :  { %14 = vsyncpa [#allocation4], 0 }
   0x4   :  { %16 = vsyncpa [#allocation4 + $0x1], 0  ;;  %s961_s26 = smov 0   ;;  %s963_s27 = smov 0  }
   0x5   :  { %s965_s28 = smov 0   ;;  %s967_s29 = smov 0  }
   0x6 LB: > { %s715_s6 = sadd.s32 4294967295, %s914_s29   ;;  %s716_s30 = sadd.s32 4294967294, %s914_s29   ;;  %s914_s29 = sphi %s967_s29, %s1179_s29   ;;  %s910_s28 = sphi %s965_s28, %s1178_s28   ;;  %s906_s27 = sphi %s963_s27, %s1177_s27   ;;  %s902_s26 = sphi %s961_s26, %s1176_s26  }
   0x7   : > { %s984_s8 = sadd.s32 1, %s914_s29   ;;  %s181_s9 = sadd.s32 1, %s910_s28 }
   0x8   : > { %s178_s10 = ssub.s32 %s914_s29, %s984_s8  ;;  %p191_p0 = scmp.ne.s32.totalorder %s910_s28, %s906_s27 }
   0x9   : > { %p179_p1 = scmp.eq.s32.totalorder %s178_s10, 0  ;;  %p192_p2 = scmp.eq.s32.totalorder %s715_s6, 1 }
   0xa   : > { %p197_p3 = scmp.ne.s32.totalorder %s906_s27, %s902_s26  ;;  %p198_p4 = scmp.eq.s32.totalorder %s716_s30, 1 }
   0xb   : > { %s994_s11 = scalar_select %p179_p1, %s910_s28, %s181_s9  }
   0xc   : > { %p996_p5 = por %p192_p2, %p191_p0  ;;  %p1000_p6 = por %p198_p4, %p197_p3 }
   0xd   : > { %p719_p7 = scmp.ge.s32.totalorder %s914_s29, 1  ;;  %p243_p8 = scmp.lt.s32.totalorder %s914_s29, 3 }
   0xf   : > { %p244_p9 = pnand %p719_p7, %p243_p8 }
  0x10   : > { %s1006_s14 = sshll.u32 (!%p244_p9), %s715_s6, 4  ;;  %v842_v1 = vld [vmem:[%s1167_s1] sm:$0xff] (!%p244_p9)   ;;  %vm381_vm0 = vcmask (!%p244_p9), 261120   ;;  %v916_v2 = vmov (!%p244_p9), 0   ;;  %v315_v4 = vld [vmem:[%s1168_s2 + $0x10] sm:$0xff] (!%p244_p9)  ;;  %v314_v5 = vld [vmem:[%s1168_s2 + $0x8] sm:$0xff] (!%p244_p9) }
  0x11   : > { %247 = sbr.rel (%p244_p9) target bundleno = 613 (0x265), region = 48  ;;  %p275_p10 = scmp.lt.s32.totalorder (!%p244_p9), %s1006_s14, 31  ;;  %772 = vmatprep.mubr.msk.bf16.mxu0 (!%p244_p9), %vm381_vm0, %v842_v1  ;;  %840 = vset.pattern.permute.xlu0 (!%p244_p9), %v916_v2  ;;  %v313_v3 = vld [vmem:[%s1168_s2] sm:$0xff] (!%p244_p9)  ;;  %v316_v6 = vld [vmem:[%s1168_s2 + $0x18] sm:$0xff] (!%p244_p9)  ;;  %v318_v15 = vld [vmem:[%s1168_s2 + $0x28] sm:$0xff] (!%p244_p9)  ;;  %vm533_vm1 = vcmask (!%p244_p9), 523264  }
  0x12   : > { %841 = vset.pattern.permute.xlu1 (!%p244_p9), %v916_v2  ;;  %323 = vperm.xlu0 (!%p244_p9), %840, %v313_v3   ;;  %v317_v14 = vld [vmem:[%s1168_s2 + $0x20] sm:$0xff] (!%p244_p9)  ;;  %v319_v18 = vld [vmem:[%s1168_s2 + $0x30] sm:$0xff] (!%p244_p9)  ;;  %v320_v19 = vld [vmem:[%s1168_s2 + $0x38] sm:$0xff] (!%p244_p9)  ;;  %s1124_s6 = scalar_lea.hbm (!%p244_p9), %s1173_s7, %s1006_s14  ;;  %s917_s10 = smov (!%p244_p9), [#allocation3]  }
  0x13   : > { %333 = vperm.xlu1 (!%p244_p9), %841, %v315_v4   ;;  %v499_v22 = vld [vmem:[%s1170_s4] sm:$0xff] (!%p244_p9)  ;;  %v500_v23 = vld [vmem:[%s1170_s4 + $0x8] sm:$0xff] (!%p244_p9)  ;;  %v501_v26 = vld [vmem:[%s1170_s4 + $0x10] sm:$0xff] (!%p244_p9) }
  0x14   : > { %v502_v27 = vld [vmem:[%s1170_s4 + $0x18] sm:$0xff] (!%p244_p9)  ;;  %v593_v30 = vld [vmem:[%s1171_s5] sm:$0xff] (!%p244_p9)  ;;  %v594_v31 = vld [vmem:[%s1171_s5 + $0x8] sm:$0xff] (!%p244_p9) }
  0x15   : > { %v595_v34 = vld [vmem:[%s1171_s5 + $0x10] sm:$0xff] (!%p244_p9)  ;;  %v596_v35 = vld [vmem:[%s1171_s5 + $0x18] sm:$0xff] (!%p244_p9)  ;;  %v630_v38 = vld [vmem:[#allocation2] sm:$0x1] (!%p244_p9) }
  0x16   : > { %328 = vperm.xlu0 (!%p244_p9), %840, %v314_v5   ;;  %v843_v52 = vld [vmem:[%s1167_s1 + $0x8] sm:$0xff] (!%p244_p9)   ;;  %v844_v53 = vld [vmem:[%s1167_s1 + $0x10] sm:$0xff] (!%p244_p9)   ;;  %v845_v54 = vld [vmem:[%s1167_s1 + $0x18] sm:$0xff] (!%p244_p9)  }
  0x17   : > { %338 = vperm.xlu1 (!%p244_p9), %841, %v316_v6   ;;  %v846_v55 = vld [vmem:[%s1169_s3] sm:$0xff] (!%p244_p9)  }
  0x18   : > { %s276_s17 = scalar_select %p275_p10, %s1006_s14, 31  ;;  %788 = vmatprep.mubr.msk.bf16.mxu1 %vm533_vm1, %v846_v55  ;;  %v636_v55 = vlaneseq }
  0x1a   : > { %s721_s20 = sshll.u32 %s276_s17, 3  ;;  %343 = vperm.xlu0 %840, %v317_v14  }
  0x1b   : > { %s1023_s25 = scalar_lea.vmem %s1166_s0, %s721_s20  ;;  %348 = vperm.xlu1 %841, %v318_v15   ;;  %s272_s20 = sand.u32 1, %s906_s27  }
  0x1c   : > { %v281_v7 = vld [vmem:[%s1023_s25] sm:$0xff]  ;;  %v282_v8 = vld [vmem:[%s1023_s25 + $0x8] sm:$0xff]  ;;  %v283_v9 = vld [vmem:[%s1023_s25 + $0x10] sm:$0xff]  ;;  %s273_s21 = scalar_lea.vmem [#allocation3], %s272_s20  ;;  %s649_s30 = scalar_lea.sflag [#allocation4], %s272_s20 }
  0x1d   : > { %v297_v10 = vpack.c.bf16 %v282_v8, %v281_v7  ;;  %v284_v11 = vld [vmem:[%s1023_s25 + $0x18] sm:$0xff]  ;;  %v285_v16 = vld [vmem:[%s1023_s25 + $0x20] sm:$0xff]  ;;  %v286_v17 = vld [vmem:[%s1023_s25 + $0x28] sm:$0xff]  ;;  %s661_s22 = sshll.u32 %s273_s21, 4  ;;  %s1126_s22 = int_to_ptr.vmem [resolvable:$true] %s661_s22 }
  0x1e   : > { %v298_v12 = vpack.c.bf16 %v284_v11, %v283_v9  ;;  %v299_v21 = vpack.c.bf16 %v286_v17, %v285_v16  ;;  %353 = vperm.xlu0 %840, %v319_v18   ;;  %v287_v24 = vld [vmem:[%s1023_s25 + $0x30] sm:$0xff]  ;;  %v288_v25 = vld [vmem:[%s1023_s25 + $0x38] sm:$0xff]  ;;  %v289_v32 = vld [vmem:[%s1023_s25 + $0x40] sm:$0xff]  ;;  %s852_s9 = scalar_lea.vmem %s1126_s22, 16 }
  0x1f   : > { %792 = vmatprep.subr.msk.bf16.mxu0 %vm381_vm0, %v297_v10  ;;  %v395_v13 = vsel %vm381_vm0, %v297_v10, 0  ;;  %358 = vperm.xlu1 %841, %v320_v19   ;;  %v300_v29 = vpack.c.bf16 %v288_v25, %v287_v24  ;;  %v290_v33 = vld [vmem:[%s1023_s25 + $0x48] sm:$0xff]  ;;  %v291_v39 = vld [vmem:[%s1023_s25 + $0x50] sm:$0xff]  ;;  %v292_v40 = vld [vmem:[%s1023_s25 + $0x58] sm:$0xff]  ;;  %p853_p11 = scmp.ne.s32.totalorder %s1126_s22, %s852_s9 }
  0x20   : > { %757 = vmatpush3.bf16.xpose.msra.mxu0 %v395_v13  ;;  %v398_v20 = vsel %vm381_vm0, %v298_v12, 0  ;;  %v401_v28 = vsel %vm381_vm0, %v299_v21, 0  ;;  %v301_v37 = vpack.c.bf16 %v290_v33, %v289_v32  ;;  %v302_v42 = vpack.c.bf16 %v292_v40, %v291_v39  ;;  %v293_v43 = vld [vmem:[%s1023_s25 + $0x60] sm:$0xff]  ;;  %v294_v44 = vld [vmem:[%s1023_s25 + $0x68] sm:$0xff]  ;;  %v295_v47 = vld [vmem:[%s1023_s25 + $0x70] sm:$0xff] }
  0x21   : > { %793 = vmatprep.subr.msk.bf16.mxu0 %vm381_vm0, %v298_v12  ;;  %v404_v36 = vsel %vm381_vm0, %v300_v29, 0  ;;  %v303_v46 = vpack.c.bf16 %v294_v44, %v293_v43  ;;  %v296_v48 = vld [vmem:[%s1023_s25 + $0x78] sm:$0xff]  ;;  %p854_p12 = pnand %p853_p11, %p996_p5  ;;  %s856_s25 = sshll.u32 %s917_s10, 4  ;;  %s857_s25 = int_to_ptr.vmem [resolvable:$false] %s856_s25 }
  0x22   : > { %505 = vperm.xlu0 %840, %v499_v22   ;;  %v407_v41 = vsel %vm381_vm0, %v301_v37, 0  ;;  %v410_v45 = vsel %vm381_vm0, %v302_v42, 0  ;;  %v304_v50 = vpack.c.bf16 %v296_v48, %v295_v47  ;;  %s858_s15 = scalar_lea.vmem %s857_s25, 32  ;;  %p859_p0 = scmp.lt.s32.totalorder %s1126_s22, %s857_s25 }
  0x23   : > { %510 = vperm.xlu1 %841, %v500_v23   ;;  %v413_v49 = vsel %vm381_vm0, %v303_v46, 0  ;;  %p855_p13 = pneg %p854_p12  ;;  %p860_p1 = scmp.lt.s32.totalorder %s858_s15, %s852_s9 }
  0x24   : > { %v416_v51 = vsel %vm381_vm0, %v304_v50, 0 }
  0x25   : > { %p861_p2 = por %p860_p1, %p859_p0 }
  0x26   : > { %515 = vperm.xlu0 %840, %v501_v26  }
  0x27   : > { %520 = vperm.xlu1 %841, %v502_v27   ;;  %p862_p3 = pnand %p861_p2, %p855_p13 }
  0x28   : > { %759 = vmatpush3.bf16.xpose.msra.mxu0 %v398_v20 }
  0x29   : > { %794 = vmatprep.subr.msk.bf16.mxu0 %vm381_vm0, %v299_v21 }
  0x2a   : > { %599 = vperm.xlu0 %840, %v593_v30  }
  0x2b   : > { %604 = vperm.xlu1 %841, %v594_v31  }
  0x2e   : > { %609 = vperm.xlu0 %840, %v595_v34  }
  0x2f   : > { %614 = vperm.xlu1 %841, %v596_v35  }
  0x30   : > { %761 = vmatpush3.bf16.xpose.msra.mxu0 %v401_v28  ;;  %v847_v28 = vld [vmem:[%s1169_s3 + $0x8] sm:$0xff]  }
  0x31   : > { %795 = vmatprep.subr.msk.bf16.mxu0 %vm381_vm0, %v300_v29 }
  0x32   : > { %633 = vperm.xlu0 %840, %v630_v38  }
  0x38   : > { %763 = vmatpush3.bf16.xpose.msra.mxu0 %v404_v36 }
  0x39   : > { %796 = vmatprep.subr.msk.bf16.mxu0 %vm381_vm0, %v301_v37 }
  0x40   : > { %765 = vmatpush3.bf16.xpose.msra.mxu0 %v407_v41 }
  0x41   : > { %797 = vmatprep.subr.msk.bf16.mxu0 %vm381_vm0, %v302_v42 }
  0x48   : > { %767 = vmatpush3.bf16.xpose.msra.mxu0 %v410_v45 }
  0x49   : > { %798 = vmatprep.subr.msk.bf16.mxu0 %vm381_vm0, %v303_v46 }
  0x50   : > { %769 = vmatpush3.bf16.xpose.msra.mxu0 %v413_v49 }
  0x51   : > { %799 = vmatprep.subr.msk.bf16.mxu0 %vm381_vm0, %v304_v50 }
  0x58   : > { %771 = vmatpush3.bf16.xpose.msra.mxu0 %v416_v51 }
  0x5f   : > { %773 = vmatmul.mubr.msk.bf16.vlgmr.msra.gmra.mrb[0].mxu0 %vm381_vm0, %v843_v52 }
  0x60   : > { %776 = vmatprep.mubr.msk.bf16.mxu0 %vm381_vm0, %v844_v53 }
  0x67   : > { %777 = vmatmul.mubr.msk.bf16.gmra.mrb[4].mxu0 %vm381_vm0, %v845_v54 }
  0x91   : > { %v324_v56 = vpop.permute.xlu0 %323 }
  0x92   : > { %v334_v57 = vpop.permute.xlu1 %333 }
  0x95   : > { %v329_v58 = vpop.permute.xlu0 %328 }
  0x96   : > { %v339_v59 = vpop.permute.xlu1 %338 }
  0x99   : > { %v344_v63 = vpop.permute.xlu0 %343 }
  0x9a   : > { %v349_v4 = vpop.permute.xlu1 %348 }
  0x9d   : > { %v354_v11 = vpop.permute.xlu0 %353 }
  0x9e   : > { %v359_v16 = vpop.permute.xlu1 %358 }
  0xa1   : > { %v506_v29 = vpop.permute.xlu0 %505 }
  0xa2   : > { %v511_v30 = vpop.permute.xlu1 %510 }
  0xa5   : > { %v516_v31 = vpop.permute.xlu0 %515 }
  0xa6   : > { %v521_v32 = vpop.permute.xlu1 %520 }
  0xa9   : > { %v600_v38 = vpop.permute.xlu0 %599 }
  0xaa   : > { %v605_v43 = vpop.permute.xlu1 %604 }
  0xad   : > { %v610_v49 = vpop.permute.xlu0 %609 }
  0xae   : > { %v615_v52 = vpop.permute.xlu1 %614 }
 0x132   : > { %v774_v60 = vpop.f32.mrb[0].mxu0 }
 0x133   : > { %v461_v61 = vadd.f32 %v774_v60, %v334_v57  ;;  %v452_v62 = vpop.f32.mrb[1].mxu0 }
 0x134   : > { %v453_v0 = vadd.f32 %v452_v62, %v324_v56  ;;  %v775_v1 = vpop.f32.mrb[2].mxu0 }
 0x135   : > { %v464_v2 = vadd.f32 %v775_v1, %v339_v59  ;;  %v455_v3 = vpop.f32.mrb[3].mxu0  ;;  %v485_v6 = vmax.f32 %v461_v61, 0.0 }
 0x136   : > { %v456_v5 = vadd.f32 %v455_v3, %v329_v58  ;;  %v483_v8 = vmax.f32 %v453_v0, 0.0  ;;  %v637_v58 = vshrl.u32 %v636_v55, 7 }
 0x137   : > { %v486_v7 = vmax.f32 %v464_v2, 0.0 }
 0x138   : > { %v484_v9 = vmax.f32 %v456_v5, 0.0  ;;  %v638_v61 = vsub.s32 0, %v637_v58 }
 0x139   : > { %v496_v10 = vpack.c.bf16 %v486_v7, %v485_v6 }
 0x13a   : > { %v778_v12 = vpop.f32.mrb[4].mxu0  ;;  %v495_v13 = vpack.c.bf16 %v484_v9, %v483_v8 }
 0x13b   : > { %v477_v14 = vadd.f32 %v778_v12, %v354_v11  ;;  %v468_v15 = vpop.f32.mrb[5].mxu0 }
 0x13c   : > { %v469_v17 = vadd.f32 %v468_v15, %v344_v63  ;;  %v779_v18 = vpop.f32.mrb[6].mxu0  ;;  %780 = vmatprep.subr.bf16.mxu1 %v495_v13  ;;  %v634_v63 = vpop.permute.xlu0 %633 }
 0x13d   : > { %v480_v19 = vadd.f32 %v779_v18, %v359_v16  ;;  %v471_v20 = vpop.f32.mrb[7].mxu0  ;;  %781 = vmatpush3.bf16.msra.mxu1 %v495_v13  ;;  %v489_v22 = vmax.f32 %v477_v14, 0.0  ;;  %v639_v1 = vrot.slane %v634_v63, %v638_v61 }
 0x13e   : > { %v472_v21 = vadd.f32 %v471_v20, %v349_v4  ;;  %782 = vmatprep.subr.bf16.mxu1 %v496_v10  ;;  %v487_v24 = vmax.f32 %v469_v17, 0.0 }
 0x13f   : > { %v490_v23 = vmax.f32 %v480_v19, 0.0 }
 0x140   : > { %v488_v25 = vmax.f32 %v472_v21, 0.0 }
 0x141   : > { %v498_v26 = vpack.c.bf16 %v490_v23, %v489_v22  ;;  %783 = vmatpush3.bf16.msra.mxu1 %v496_v10 }
 0x142   : > { %v497_v27 = vpack.c.bf16 %v488_v25, %v487_v24 }
 0x144   : > { %784 = vmatprep.subr.bf16.mxu1 %v497_v27 }
 0x145   : > { %785 = vmatpush3.bf16.msra.mxu1 %v497_v27 }
 0x146   : > { %786 = vmatprep.subr.bf16.mxu1 %v498_v26 }
 0x149   : > { %787 = vmatpush3.bf16.msra.mxu1 %v498_v26 }
 0x14c   : > { %789 = vmatmul.mubr.msk.bf16.vlgmr.msra.gmra.mrb[0].mxu1 %vm533_vm1, %v847_v28 }
 0x21f   : > { %v790_v33 = vpop.f32.mrb[0].mxu1 }
 0x220   : > { %v574_v34 = vpop.f32.mrb[1].mxu1  ;;  %v583_v35 = vadd.f32 %v790_v33, %v516_v31 }
 0x221   : > { %v575_v36 = vadd.f32 %v574_v34, %v506_v29  ;;  %v791_v37 = vpop.f32.mrb[2].mxu1 }
 0x222   : > { %v577_v39 = vpop.f32.mrb[3].mxu1  ;;  %v586_v41 = vadd.f32 %v791_v37, %v521_v32  ;;  %v591_v44 = vmax.f32 %v583_v35, 0.0 }
 0x223   : > { %v589_v40 = vmax.f32 %v575_v36, 0.0  ;;  %v578_v42 = vadd.f32 %v577_v39, %v511_v30 }
 0x224   : > { %v592_v47 = vmax.f32 %v586_v41, 0.0  ;;  %v619_v50 = vmul.f32 %v610_v49, %v591_v44 }
 0x225   : > { %v590_v45 = vmax.f32 %v578_v42, 0.0  ;;  %v617_v46 = vmul.f32 %v600_v38, %v589_v40 }
 0x226   : > { %v620_v53 = vmul.f32 %v615_v52, %v592_v47 }
 0x227   : > { %v618_v48 = vmul.f32 %v605_v43, %v590_v45 }
 0x229   : > { %v621_v51 = vadd.f32 %v618_v48, %v617_v46 }
 0x22b   : > { %v622_v54 = vadd.f32 %v621_v51, %v619_v50 }
 0x22d   : > { %v623_v56 = vadd.f32 %v622_v54, %v620_v53 }
 0x22f   : > { %v624_v57 = vrot.slane %v623_v56, 4 }
 0x231   : > { %v625_v59 = vadd.f32 %v624_v57, %v623_v56 }
 0x233   : > { %v626_v60 = vrot.slane %v625_v59, 2 }
 0x235   : > { %v627_v62 = vadd.f32 %v626_v60, %v625_v59 }
 0x237   : > { %v628_v0 = vrot.slane %v627_v62, 1 }
 0x239   : > { %v629_v2 = vadd.f32 %v628_v0, %v627_v62 }
 0x23b   : > { %v640_v3 = vadd.f32 %v639_v1, %v629_v2 }
 0x23d   : > { %v734_v4 = vmul.f32 -1.442695, %v640_v3 }
 0x23f   : > { %848 = vpow2.f32 %v734_v4 }
 0x249   : > { %v849_v5 = vpop.eup %848 }
 0x24a   : > { %v644_v6 = vadd.f32 1.0, %v849_v5 }
 0x24c   : > { %850 = vrcp.f32 %v644_v6 }
 0x256   : > { %v851_v7 = vpop.eup %850 }
 0x257   : > { %647 = vst [vmem:[%s273_s21] sm:$0x1] %v851_v7 }
 0x258   : > { %865 = shalt.err (!%p862_p3)
}
 0x259   : > { %s866_s14 = scalar_lea.hbm %s1124_s6, 16  ;;  %s870_s18 = scalar_lea.hbm %s1173_s7, 32 }
 0x25a   : > { %p867_p4 = scmp.ne.s32.totalorder %s1124_s6, %s866_s14  ;;  %p871_p9 = scmp.lt.u32.totalorder %s1124_s6, %s1173_s7 }
 0x25b   : > { %p872_p10 = scmp.lt.u32.totalorder %s870_s18, %s866_s14  ;;  %p874_p12 = scmp.lt.u32.totalorder %s866_s14, %s1124_s6 }
 0x25c   : > { %p868_p7 = pnand %p867_p4, %p996_p5 }
 0x25d   : > { %p873_p11 = por %p872_p10, %p871_p9 }
 0x25e   : > { %p869_p8 = pneg %p868_p7 }
 0x25f   : > { %p875_p13 = por %p874_p12, %p873_p11 }
 0x261   : > { %p876_p0 = pnand %p875_p13, %p869_p8 }
 0x263   : > { %879 = shalt.err (!%p876_p0)
}
 0x264   : > { %800 = dma.vmem_to_hbm [thread:$0]  (%p996_p5), %s1126_s22, 16, %s1124_s6, %s649_s30  }
 0x265 PF: > { %p806_p1 = scmp.ge.s32.totalorder %s914_s29, 2  ;;  %s673_s21 = sand.u32 1, %s902_s26  }
 0x266   : > { %s674_s23 = scalar_lea.sflag [#allocation4], %s673_s21 }
 0x267   : > { %p803_p2 = pnand %p806_p1, %p1000_p6 }
 0x269   : > { %897 = dma.done.wait (!%p803_p2), %s674_s23, 16  }
 0x26a   : > { %899 = vsyncadd (!%p803_p2), %s674_s23, 4294967280  ;;  %p19_p3 = scmp.ge.s32.totalorder %s984_s8, 4   ;;  %s1176_s26 = smov %s906_s27 }
 0x26b   : > { %s1177_s27 = smov %s910_s28  ;;  %s1178_s28 = smov %s994_s11 }
 0x26c   : > { %s1179_s29 = smov %s984_s8  ;;  %21 = sbr.rel (!%p19_p3) target bundleno = 6 (0x6), region = 83 }
 0x273   :  { %678 = vsyncpa [#allocation4], 1 }
 0x274   :  { %680 = vsyncpa [#allocation4 + $0x1], 1 }

</bundles_post_ra>
